<compile_context>
chip_gen: v7x
topology: tpu7x:2x2x1
jax: 0.10.0
libtpu: 0.0.40
codegen_flags: <defaults>
</compile_context>

<pallas_src>
import functools
import math

import jax
import jax.numpy as jnp
from jax.experimental import pallas as pl
from jax.experimental.pallas import tpu as pltpu

EPS = 1e-10  # value of the (unshown) EPS global in the reference code

_HALF_LOG_2PI = 0.9189385332046727  # 0.5 * log(2 * pi)


# ---------------------------------------------------------------------------
# In-kernel lgamma: branch-free shift-by-4 + Stirling series (x > 0).
# EUP cost per element: 3 logs + 1 reciprocal.
# ---------------------------------------------------------------------------

def _lgamma(x):
    z = x + 4.0
    r = 1.0 / z
    r2 = r * r
    # 1/(12 z) - 1/(360 z^3) + 1/(1260 z^5)
    corr = r * (8.3333333333333329e-02
                + r2 * (-2.7777777777777779e-03
                        + r2 * 7.9365079365079365e-04))
    stirling = (z - 0.5) * jnp.log(z) - z + _HALF_LOG_2PI + corr
    # lgamma(x) = lgamma(x + 4) - log(x (x+1) (x+2) (x+3));
    # the product is split so it cannot overflow float32.
    p01 = x * (x + 1.0)
    p23 = (x + 2.0) * (x + 3.0)
    return stirling - jnp.log(p01) - jnp.log(p23)


# ---------------------------------------------------------------------------
# Host-side (float64) digamma for constant folding of the target side.
# ---------------------------------------------------------------------------

def _host_digamma(x):
    """digamma(x) for x > 0, float64, recurrence to x >= 10 + asymptotic."""
    acc = 0.0
    while x < 10.0:
        acc -= 1.0 / x
        x += 1.0
    inv = 1.0 / x
    inv2 = inv * inv
    s = (math.log(x) - 0.5 * inv
         - inv2 * (1.0 / 12.0
                   - inv2 * (1.0 / 120.0
                             - inv2 * (1.0 / 252.0 - inv2 * (1.0 / 240.0)))))
    return s + acc


# ---------------------------------------------------------------------------
# Pallas kernel: batch-tiled Dirichlet KL divergence (in-domain targets).
# Each grid step writes the per-row loss for its batch tile (parallel grid).
# ---------------------------------------------------------------------------

def _dirichlet_kl_kernel(labels_ref, logits_ref, gain_ref, out_ref, *,
                         dphi_off, d_dphi, k_row, batch, tb):
    pid = pl.program_id(0)

    logits = logits_ref[...].astype(jnp.float32)   # (TB, C)
    gain = gain_ref[...].astype(jnp.float32)       # (TB, 1)
    labels = labels_ref[...]                       # (TB, 1) int32
    TB, C = logits.shape

    # conc = mean * precision = exp(logits + gain); precision = rowsum(conc).
    conc = jnp.exp(logits + gain)                            # (TB, C)
    precision = jnp.sum(conc, axis=1, keepdims=True)         # (TB, 1)

    # concentration at the label column via iota compare (no gather)
    col = jax.lax.broadcasted_iota(jnp.int32, (TB, C), 1)
    sel = jnp.where(col == labels, conc, 0.0)                # (TB, C)

    # Per-element term fused into a single cross-lane reduction:
    #   lgamma(conc + EPS) - (dphi_on - dphi_off) * conc[label]
    elem = _lgamma(conc + EPS) - d_dphi * sel
    row_sum = jnp.sum(elem, axis=1, keepdims=True)           # (TB, 1)

    per_row = (row_sum - dphi_off * precision
               - _lgamma(precision + EPS) + k_row)           # (TB, 1)

    # zero rows that only exist because of batch padding
    row_idx = pid * tb + jax.lax.broadcasted_iota(jnp.int32, (TB, 1), 0)
    out_ref[...] = jnp.where(row_idx < batch, per_row, 0.0)


def dirichlet_kl_div(logits, gain, labels, *, alpha, smoothing=0.01,
                     block_b=1024):
    """Pallas wrapper matching DirichletKLDiv.forward(in_domain=True).

    Assumes `gain` is a per-row scalar (shape (B,) or (B, 1)), as implied by
    `mean * precision == exp(logits + gain)`.
    """
    B, C = logits.shape
    gain = jnp.reshape(gain, (B, 1))

    if smoothing < EPS:               # label_smooth() no-op branch
        smoothing = 0.0

    # ---- host constant folding of all target-side special functions -------
    tm_on = 1.0 - (C - 1) * smoothing            # label-class target mean
    tc_on = alpha * tm_on
    tc_off = alpha * smoothing
    lg_alpha = math.lgamma(alpha + EPS)
    sum_lg_target = ((C - 1) * math.lgamma(tc_off + EPS)
                     + math.lgamma(tc_on + EPS))
    dig_alpha = _host_digamma(alpha + EPS)
    dphi_on = _host_digamma(tc_on + EPS) - dig_alpha
    dphi_off = _host_digamma(tc_off + EPS) - dig_alpha
    d_dphi = dphi_on - dphi_off
    k_row = (lg_alpha - sum_lg_target
             + tc_on * dphi_on + (C - 1) * tc_off * dphi_off)

    # ---- batch tiling: multiple of 8 sublanes, VMEM-bounded ----------------
    bytes_per_row = max(int(C) * max(logits.dtype.itemsize, 4), 1)
    tb = min(int(block_b), (4 * 1024 * 1024) // bytes_per_row)
    tb = min(tb, ((B + 7) // 8) * 8)
    tb = max(8, (tb // 8) * 8)
    b_pad = ((B + tb - 1) // tb) * tb
    if b_pad != B:
        pad = b_pad - B
        logits = jnp.pad(logits, ((0, pad), (0, 0)))
        gain = jnp.pad(gain, ((0, pad), (0, 0)))
        labels = jnp.pad(labels, ((0, pad),))
    labels2d = labels.reshape(b_pad, 1).astype(jnp.int32)
    grid = (b_pad // tb,)

    kernel = functools.partial(
        _dirichlet_kl_kernel,
        dphi_off=float(dphi_off), d_dphi=float(d_dphi), k_row=float(k_row),
        batch=B, tb=tb)

    n_elem = b_pad * C
    cost = pl.CostEstimate(
        flops=int(n_elem * 30),
        transcendentals=int(n_elem * 5),   # exp + 3 logs + 1 recip per element
        bytes_accessed=int(logits.size * logits.dtype.itemsize
                           + gain.size * gain.dtype.itemsize
                           + labels2d.size * 4 + b_pad * 4),
    )

    per_row = pl.pallas_call(
        kernel,
        out_shape=jax.ShapeDtypeStruct((b_pad, 1), jnp.float32),
        grid=grid,
        in_specs=[
            pl.BlockSpec((tb, 1), lambda i: (i, 0)),   # labels
            pl.BlockSpec((tb, C), lambda i: (i, 0)),   # logits
            pl.BlockSpec((tb, 1), lambda i: (i, 0)),   # gain
        ],
        out_specs=pl.BlockSpec((tb, 1), lambda i: (i, 0)),
        compiler_params=pltpu.CompilerParams(
            dimension_semantics=("parallel",),
            vmem_limit_bytes=32 * 1024 * 1024),
        cost_estimate=cost,
    )(labels2d, logits, gain)

    # padded rows are already zero; tiny final mean handled by XLA
    return jnp.sum(per_row) * (1.0 / B)


# ---------------------------------------------------------------------------
# Pure-JAX reference (mirrors the PyTorch code) for a correctness check.
# ---------------------------------------------------------------------------

def _reference(logits, gain, labels, alpha, smoothing):
    from jax.scipy.special import gammaln, digamma
    B, C = logits.shape
    mean = jax.nn.softmax(logits, axis=1)
    precision = jnp.sum(jnp.exp(logits + gain), axis=1, keepdims=True)
    labels_one_hot = jax.nn.one_hot(labels, C, dtype=jnp.float32)
    target_mean = (1.0 - C * smoothing) * labels_one_hot + smoothing
    target_precision = alpha * jnp.ones((B, 1), jnp.float32)

    dlgamma = gammaln(target_precision + EPS) - gammaln(precision + EPS)
    dsumlgamma = jnp.sum(gammaln(mean * precision + EPS)
                         - gammaln(target_mean * target_precision + EPS), axis=1)
    dconc = target_precision * target_mean - precision * mean
    dphiconc = (digamma(target_mean * target_precision + EPS)
                - digamma(target_precision + EPS))
    dprod = jnp.sum(dconc * dphiconc, axis=1)
    loss = jnp.squeeze(dlgamma) + dsumlgamma + dprod
    return jnp.mean(loss)


if __name__ == "__main__":
    B, C = 20, 16          # B not a multiple of the tile -> exercises padding
    alpha = 100.0          # DirichletKLDiv(alpha=100.0)
    smoothing = 0.01       # default in __init__

    key = jax.random.PRNGKey(0)
    k1, k2, k3 = jax.random.split(key, 3)
    logits = jax.random.normal(k1, (B, C), dtype=jnp.float32)
    gain = 0.1 * jax.random.normal(k2, (B, 1), dtype=jnp.float32)
    labels = jax.random.randint(k3, (B,), 0, C, dtype=jnp.int32)

    # block_b=8 forces a multi-step grid (3 batch tiles) to exercise the
    # parallel-grid / per-tile output / padding-mask path at this small size.
    loss = dirichlet_kl_div(logits, gain, labels, alpha=alpha,
                            smoothing=smoothing, block_b=8)
    loss = jax.block_until_ready(loss)

    ref = _reference(logits, gain, labels, alpha, smoothing)
    assert jnp.allclose(loss, ref, rtol=5e-3, atol=5e-2), (float(loss), float(ref))
    print("KERNEL_OK")
</pallas_src>

<mosaic_0001>
module attributes {stable_mosaic.version = 11 : i64} {
  func.func @_dirichlet_kl_kernel(%arg0: i32, %arg1: memref<8x1xi32, #tpu.memory_space<vmem>>, %arg2: memref<8x16xf32, #tpu.memory_space<vmem>>, %arg3: memref<8x1xf32, #tpu.memory_space<vmem>>, %arg4: memref<8x1xf32, #tpu.memory_space<vmem>>) attributes {dimension_semantics = [#tpu.dimension_semantics<parallel>], iteration_bounds = array<i64: 3>, scalar_prefetch = 0 : i64, scratch_operands = 0 : i64, tpu.core_type = #tpu.core_type<tc>, window_params = [{transform_indices = @transform_0, window_bounds = array<i64: 8, 1>}, {transform_indices = @transform_1, window_bounds = array<i64: 8, 16>}, {transform_indices = @transform_2, window_bounds = array<i64: 8, 1>}, {transform_indices = @transform_3, window_bounds = array<i64: 8, 1>}]} {
    %c0 = arith.constant 0 : index
    %c0_0 = arith.constant 0 : index
    %0 = vector.load %arg2[%c0, %c0_0] : memref<8x16xf32, #tpu.memory_space<vmem>>, vector<8x16xf32>
    %c0_1 = arith.constant 0 : index
    %c0_2 = arith.constant 0 : index
    %1 = vector.load %arg3[%c0_1, %c0_2] : memref<8x1xf32, #tpu.memory_space<vmem>>, vector<8x1xf32>
    %c0_3 = arith.constant 0 : index
    %c0_4 = arith.constant 0 : index
    %2 = vector.load %arg1[%c0_3, %c0_4] : memref<8x1xi32, #tpu.memory_space<vmem>>, vector<8x1xi32>
    %3 = vector.broadcast %1 : vector<8x1xf32> to vector<8x16xf32>
    %4 = arith.addf %0, %3 : vector<8x16xf32>
    %5 = math.exp %4 : vector<8x16xf32>
    %cst = arith.constant dense<0.000000e+00> : vector<8xf32>
    %6 = vector.multi_reduction <add>, %5, %cst [1] : vector<8x16xf32> to vector<8xf32>
    %7 = vector.shape_cast %6 : vector<8xf32> to vector<8x1xf32>
    %8 = tpu.iota {dimensions = array<i32: 1>} : vector<8x16xi32>
    %9 = vector.broadcast %2 : vector<8x1xi32> to vector<8x16xi32>
    %10 = arith.cmpi eq, %8, %9 : vector<8x16xi32>
    %cst_5 = arith.constant 0.000000e+00 : f32
    %11 = vector.broadcast %cst_5 : f32 to vector<8x16xf32>
    %12 = arith.select %10, %5, %11 : vector<8x16xi1>, vector<8x16xf32>
    %cst_6 = arith.constant 1.000000e-10 : f32
    %13 = vector.broadcast %cst_6 : f32 to vector<8x16xf32>
    %14 = arith.addf %5, %13 : vector<8x16xf32>
    %cst_7 = arith.constant 4.000000e+00 : f32
    %15 = vector.broadcast %cst_7 : f32 to vector<8x16xf32>
    %16 = arith.addf %14, %15 : vector<8x16xf32>
    %cst_8 = arith.constant 1.000000e+00 : f32
    %17 = vector.broadcast %cst_8 : f32 to vector<8x16xf32>
    %18 = arith.divf %17, %16 : vector<8x16xf32>
    %19 = arith.mulf %18, %18 : vector<8x16xf32>
    %cst_9 = arith.constant 7.93650805E-4 : f32
    %20 = vector.broadcast %cst_9 : f32 to vector<8x16xf32>
    %21 = arith.mulf %19, %20 : vector<8x16xf32>
    %cst_10 = arith.constant -0.00277777785 : f32
    %22 = vector.broadcast %cst_10 : f32 to vector<8x16xf32>
    %23 = arith.addf %22, %21 : vector<8x16xf32>
    %24 = arith.mulf %19, %23 : vector<8x16xf32>
    %cst_11 = arith.constant 0.0833333358 : f32
    %25 = vector.broadcast %cst_11 : f32 to vector<8x16xf32>
    %26 = arith.addf %25, %24 : vector<8x16xf32>
    %27 = arith.mulf %18, %26 : vector<8x16xf32>
    %cst_12 = arith.constant 5.000000e-01 : f32
    %28 = vector.broadcast %cst_12 : f32 to vector<8x16xf32>
    %29 = arith.subf %16, %28 : vector<8x16xf32>
    %30 = math.log %16 : vector<8x16xf32>
    %31 = arith.mulf %29, %30 : vector<8x16xf32>
    %32 = arith.subf %31, %16 : vector<8x16xf32>
    %cst_13 = arith.constant 0.918938517 : f32
    %33 = vector.broadcast %cst_13 : f32 to vector<8x16xf32>
    %34 = arith.addf %32, %33 : vector<8x16xf32>
    %35 = arith.addf %34, %27 : vector<8x16xf32>
    %cst_14 = arith.constant 1.000000e+00 : f32
    %36 = vector.broadcast %cst_14 : f32 to vector<8x16xf32>
    %37 = arith.addf %14, %36 : vector<8x16xf32>
    %38 = arith.mulf %14, %37 : vector<8x16xf32>
    %cst_15 = arith.constant 2.000000e+00 : f32
    %39 = vector.broadcast %cst_15 : f32 to vector<8x16xf32>
    %40 = arith.addf %14, %39 : vector<8x16xf32>
    %cst_16 = arith.constant 3.000000e+00 : f32
    %41 = vector.broadcast %cst_16 : f32 to vector<8x16xf32>
    %42 = arith.addf %14, %41 : vector<8x16xf32>
    %43 = arith.mulf %40, %42 : vector<8x16xf32>
    %44 = math.log %38 : vector<8x16xf32>
    %45 = arith.subf %35, %44 : vector<8x16xf32>
    %46 = math.log %43 : vector<8x16xf32>
    %47 = arith.subf %45, %46 : vector<8x16xf32>
    %cst_17 = arith.constant 5.01397324 : f32
    %48 = vector.broadcast %cst_17 : f32 to vector<8x16xf32>
    %49 = arith.mulf %48, %12 : vector<8x16xf32>
    %50 = arith.subf %47, %49 : vector<8x16xf32>
    %cst_18 = arith.constant dense<0.000000e+00> : vector<8xf32>
    %51 = vector.multi_reduction <add>, %50, %cst_18 [1] : vector<8x16xf32> to vector<8xf32>
    %52 = vector.shape_cast %51 : vector<8xf32> to vector<8x1xf32>
    %cst_19 = arith.constant -5.1773777 : f32
    %53 = vector.broadcast %cst_19 : f32 to vector<8x1xf32>
    %54 = arith.mulf %53, %7 : vector<8x1xf32>
    %55 = arith.subf %52, %54 : vector<8x1xf32>
    %cst_20 = arith.constant 1.000000e-10 : f32
    %56 = vector.broadcast %cst_20 : f32 to vector<8x1xf32>
    %57 = arith.addf %7, %56 : vector<8x1xf32>
    %cst_21 = arith.constant 4.000000e+00 : f32
    %58 = vector.broadcast %cst_21 : f32 to vector<8x1xf32>
    %59 = arith.addf %57, %58 : vector<8x1xf32>
    %cst_22 = arith.constant 1.000000e+00 : f32
    %60 = vector.broadcast %cst_22 : f32 to vector<8x1xf32>
    %61 = arith.divf %60, %59 : vector<8x1xf32>
    %62 = arith.mulf %61, %61 : vector<8x1xf32>
    %cst_23 = arith.constant 7.93650805E-4 : f32
    %63 = vector.broadcast %cst_23 : f32 to vector<8x1xf32>
    %64 = arith.mulf %62, %63 : vector<8x1xf32>
    %cst_24 = arith.constant -0.00277777785 : f32
    %65 = vector.broadcast %cst_24 : f32 to vector<8x1xf32>
    %66 = arith.addf %65, %64 : vector<8x1xf32>
    %67 = arith.mulf %62, %66 : vector<8x1xf32>
    %cst_25 = arith.constant 0.0833333358 : f32
    %68 = vector.broadcast %cst_25 : f32 to vector<8x1xf32>
    %69 = arith.addf %68, %67 : vector<8x1xf32>
    %70 = arith.mulf %61, %69 : vector<8x1xf32>
    %cst_26 = arith.constant 5.000000e-01 : f32
    %71 = vector.broadcast %cst_26 : f32 to vector<8x1xf32>
    %72 = arith.subf %59, %71 : vector<8x1xf32>
    %73 = math.log %59 : vector<8x1xf32>
    %74 = arith.mulf %72, %73 : vector<8x1xf32>
    %75 = arith.subf %74, %59 : vector<8x1xf32>
    %cst_27 = arith.constant 0.918938517 : f32
    %76 = vector.broadcast %cst_27 : f32 to vector<8x1xf32>
    %77 = arith.addf %75, %76 : vector<8x1xf32>
    %78 = arith.addf %77, %70 : vector<8x1xf32>
    %cst_28 = arith.constant 1.000000e+00 : f32
    %79 = vector.broadcast %cst_28 : f32 to vector<8x1xf32>
    %80 = arith.addf %57, %79 : vector<8x1xf32>
    %81 = arith.mulf %57, %80 : vector<8x1xf32>
    %cst_29 = arith.constant 2.000000e+00 : f32
    %82 = vector.broadcast %cst_29 : f32 to vector<8x1xf32>
    %83 = arith.addf %57, %82 : vector<8x1xf32>
    %cst_30 = arith.constant 3.000000e+00 : f32
    %84 = vector.broadcast %cst_30 : f32 to vector<8x1xf32>
    %85 = arith.addf %57, %84 : vector<8x1xf32>
    %86 = arith.mulf %83, %85 : vector<8x1xf32>
    %87 = math.log %81 : vector<8x1xf32>
    %88 = arith.subf %78, %87 : vector<8x1xf32>
    %89 = math.log %86 : vector<8x1xf32>
    %90 = arith.subf %88, %89 : vector<8x1xf32>
    %91 = arith.subf %55, %90 : vector<8x1xf32>
    %cst_31 = arith.constant -23.7397881 : f32
    %92 = vector.broadcast %cst_31 : f32 to vector<8x1xf32>
    %93 = arith.addf %91, %92 : vector<8x1xf32>
    %c8_i32 = arith.constant 8 : i32
    %94 = arith.muli %arg0, %c8_i32 : i32
    %95 = tpu.iota {dimensions = array<i32: 0>} : vector<8x1xi32>
    %96 = vector.broadcast %94 : i32 to vector<8x1xi32>
    %97 = arith.addi %96, %95 : vector<8x1xi32>
    %c20_i32 = arith.constant 20 : i32
    %98 = vector.broadcast %c20_i32 : i32 to vector<8x1xi32>
    %99 = arith.cmpi slt, %97, %98 : vector<8x1xi32>
    %cst_32 = arith.constant 0.000000e+00 : f32
    %100 = vector.broadcast %cst_32 : f32 to vector<8x1xf32>
    %101 = arith.select %99, %93, %100 : vector<8x1xi1>, vector<8x1xf32>
    %c0_33 = arith.constant 0 : index
    %c0_34 = arith.constant 0 : index
    %102 = vector.load %arg4[%c0_33, %c0_34] : memref<8x1xf32, #tpu.memory_space<vmem>>, vector<8x1xf32>
    tpu.vector_store %arg4[%c0_33, %c0_34], %101 {strides = array<i32>} : memref<8x1xf32, #tpu.memory_space<vmem>>, vector<8x1xf32>,
    return
  }
  func.func @transform_0(%arg0: i32) -> (i32, i32) {
    %c0_i32 = arith.constant 0 : i32
    %c0_i32_0 = arith.constant 0 : i32
    return %arg0, %c0_i32 : i32, i32
  }
  func.func @transform_1(%arg0: i32) -> (i32, i32) {
    %c0_i32 = arith.constant 0 : i32
    %c0_i32_0 = arith.constant 0 : i32
    return %arg0, %c0_i32 : i32, i32
  }
  func.func @transform_2(%arg0: i32) -> (i32, i32) {
    %c0_i32 = arith.constant 0 : i32
    %c0_i32_0 = arith.constant 0 : i32
    return %arg0, %c0_i32 : i32, i32
  }
  func.func @transform_3(%arg0: i32) -> (i32, i32) {
    %c0_i32 = arith.constant 0 : i32
    %c0_i32_0 = arith.constant 0 : i32
    return %arg0, %c0_i32 : i32, i32
  }
}

</mosaic_0001>

<bundles_post_ra>
// kernel: tpu_custom_call.1
= control target key start
LH: loop header
LB: loop body
LE: loop exit
PB: predicated region body
PF: predicated region fallthrough
CT: control target
= control target key end

     0   :  { %s444_s12 = smov 0   ;;  %s480_s0 = inlined_call_operand.vmem [shape: s32[24,1], index: 0, kind: input, shape index: {}]   ;;  %s481_s1 = inlined_call_operand.vmem [shape: f32[24,16], index: 1, kind: input, shape index: {}]   ;;  %s482_s2 = inlined_call_operand.vmem [shape: f32[24,1], index: 2, kind: input, shape index: {}]   ;;  %s483_s3 = inlined_call_operand.vmem [shape: f32[24,1], index: 3, kind: output, shape index: {}]  }
   0x1 LB: > { %s450_s13 = sadd.s32 4294967295, %s421_s12   ;;  %p377_p0 = scmp.ge.s32.totalorder %s421_s12, 1  ;;  %s421_s12 = sphi %s444_s12, %s13_s12  }
   0x2   : > { %p154_p1 = scmp.lt.s32.totalorder %s421_s12, 4 }
   0x4   : > { %p155_p2 = pnand %p377_p0, %p154_p1 }
   0x5   : > { %p184_p3 = scmp.lt.s32.totalorder (!%p155_p2), %s450_s13, 2  ;;  %v423_v0 = vmov (!%p155_p2), 0   ;;  %vm211_vm0 = vcmask (!%p155_p2), 130048   ;;  %v215_v23 = vlaneseq (!%p155_p2)  ;;  %s384_s25 = sshll.u32 (!%p155_p2), %s450_s13, 3  ;;  %vm294_vm3 = vcmask (!%p155_p2), 7168  }
   0x6   : > { %158 = sbr.rel (%p155_p2) target bundleno = 347 (0x15b), region = 32  ;;  %396 = vset.pattern.permute.xlu0 (!%p155_p2), %v423_v0 }
   0x7   : > { %v216_v27 = vand.u32 (!%p155_p2), 127, %v215_v23 }
   0xd   : > { %s185_s14 = scalar_select %p184_p3, %s450_s13, 2 }
   0xf   : > { %s456_s15 = sshll.u32 %s185_s14, 3 }
  0x10   : > { %s195_s18 = scalar_lea.vmem %s482_s2, %s456_s15  ;;  %s187_s21 = scalar_lea.vmem %s480_s0, %s456_s15 }
  0x11   : > { %v201_v1 = vld [vmem:[%s195_s18] sm:$0xff]  ;;  %s191_s24 = scalar_lea.vmem %s481_s1, %s456_s15  ;;  %s199_s28 = scalar_lea.vmem %s483_s3, %s456_s15 }
  0x12   : > { %205 = vperm.xlu0 %396, %v201_v1   ;;  %v202_v2 = vld [vmem:[%s187_s21] sm:$0xff] }
  0x13   : > { %v200_v3 = vld [vmem:[%s191_s24] sm:$0xff] }
  0x16   : > { %218 = vperm.xlu0 %396, %v202_v2  }
  0x91   : > { %v206_v4 = vpop.permute.xlu0 %205 }
  0x92   : > { %v208_v5 = vadd.f32 %v206_v4, %v200_v3  ;;  %v289_v4 = vshrl.u32 %v215_v23, 7 }
  0x94   : > { %v209_v6 = vmul.f32 1.442695, %v208_v5 }
  0x95   : > { %v219_v30 = vpop.permute.xlu0 %218 }
  0x96   : > { %397 = vpow2.f32 %v209_v6  ;;  %vm220_vm1 = vcmp.eq.s32.totalorder %v216_v27, %v219_v30  ;;  %v290_v6 = vstv %s384_s25 }
  0xa0   : > { %v398_v7 = vpop.eup %397 }
  0xa1   : > { %v212_v8 = vsel %vm211_vm0, %v398_v7, 0.0  ;;  %v222_v9 = vadd.f32 1e-10, %v398_v7  ;;  %v221_v36 = vsel %vm220_vm1, %v398_v7, 0.0 }
  0xa2   : > { %213 = vadd.xlane.f32.xlu1 %v212_v8  ;;  %v250_v39 = vmul.f32 5.013973, %v221_v36 }
  0xa3   : > { %v223_v10 = vadd.f32 4.0, %v222_v9  ;;  %v239_v11 = vadd.f32 1.0, %v222_v9  ;;  %v241_v12 = vadd.f32 2.0, %v222_v9  ;;  %v242_v13 = vadd.f32 3.0, %v222_v9 }
  0xa5   : > { %399 = vrcp.f32 %v223_v10  ;;  %v240_v14 = vmul.f32 %v239_v11, %v222_v9  ;;  %v243_v15 = vmul.f32 %v242_v13, %v241_v12  ;;  %v382_v19 = vadd.f32 -0.5, %v223_v10 }
  0xa6   : > { %401 = vlog2.f32 %v223_v10  ;;  %v291_v9 = vadd.s32 %v290_v6, %v289_v4 }
  0xa7   : > { %403 = vlog2.f32 %v240_v14 }
  0xa8   : > { %405 = vlog2.f32 %v243_v15  ;;  %vm292_vm2 = vcmp.lt.s32.totalorder %v291_v9, 20 }
  0xaf   : > { %v400_v16 = vpop.eup %399 }
  0xb0   : > { %v402_v17 = vpop.eup %401  ;;  %v226_v18 = vmul.f32 %v400_v16, %v400_v16 }
  0xb1   : > { %v234_v20 = vmul.f32 0.6931472, %v402_v17  ;;  %v404_v29 = vpop.eup %403 }
  0xb2   : > { %v227_v21 = vmul.f32 0.0007936508, %v226_v18  ;;  %v406_v33 = vpop.eup %405  ;;  %v245_v35 = vmul.f32 0.6931472, %v404_v29 }
  0xb3   : > { %v235_v22 = vmul.f32 %v382_v19, %v234_v20  ;;  %v248_v38 = vmul.f32 0.6931472, %v406_v33 }
  0xb4   : > { %v228_v24 = vadd.f32 -0.0027777778, %v227_v21 }
  0xb5   : > { %v236_v26 = vsub.f32 %v235_v22, %v223_v10 }
  0xb6   : > { %v229_v25 = vmul.f32 %v228_v24, %v226_v18 }
  0xb7   : > { %v237_v32 = vadd.f32 0.9189385, %v236_v26 }
  0xb8   : > { %v230_v28 = vadd.f32 0.083333336, %v229_v25 }
  0xba   : > { %v231_v31 = vmul.f32 %v400_v16, %v230_v28 }
  0xbc   : > { %v238_v34 = vadd.f32 %v237_v32, %v231_v31 }
  0xbe   : > { %v246_v37 = vsub.f32 %v238_v34, %v245_v35 }
  0xc0   : > { %v249_v40 = vsub.f32 %v246_v37, %v248_v38 }
  0xc2   : > { %v251_v41 = vsub.f32 %v249_v40, %v250_v39 }
  0xc4   : > { %v252_v42 = vsel %vm211_vm0, %v251_v41, 0.0 }
  0xc5   : > { %253 = vadd.xlane.f32.xlu1 %v252_v42 }
 0x12f   : > { %v214_v43 = vpop.xlane.xlu1 %213 }
 0x130   : > { %v257_v44 = vadd.f32 1e-10, %v214_v43  ;;  %v255_v7 = vmul.f32 -5.1773777, %v214_v43 }
 0x132   : > { %v258_v45 = vadd.f32 4.0, %v257_v44  ;;  %v274_v46 = vadd.f32 1.0, %v257_v44  ;;  %v276_v48 = vadd.f32 2.0, %v257_v44  ;;  %v277_v49 = vadd.f32 3.0, %v257_v44 }
 0x134   : > { %407 = vrcp.f32 %v258_v45  ;;  %v275_v47 = vmul.f32 %v274_v46, %v257_v44  ;;  %v383_v53 = vadd.f32 -0.5, %v258_v45  ;;  %v278_v55 = vmul.f32 %v277_v49, %v276_v48 }
 0x135   : > { %409 = vlog2.f32 %v258_v45 }
 0x136   : > { %411 = vlog2.f32 %v275_v47 }
 0x137   : > { %413 = vlog2.f32 %v278_v55 }
 0x13e   : > { %v408_v50 = vpop.eup %407 }
 0x13f   : > { %v410_v51 = vpop.eup %409  ;;  %v261_v52 = vmul.f32 %v408_v50, %v408_v50 }
 0x140   : > { %v269_v54 = vmul.f32 0.6931472, %v410_v51  ;;  %v412_v0 = vpop.eup %411 }
 0x141   : > { %v262_v56 = vmul.f32 0.0007936508, %v261_v52  ;;  %v280_v2 = vmul.f32 0.6931472, %v412_v0  ;;  %v414_v3 = vpop.eup %413 }
 0x142   : > { %v270_v57 = vmul.f32 %v383_v53, %v269_v54  ;;  %v283_v8 = vmul.f32 0.6931472, %v414_v3 }
 0x143   : > { %v263_v58 = vadd.f32 -0.0027777778, %v262_v56 }
 0x144   : > { %v271_v60 = vsub.f32 %v270_v57, %v258_v45 }
 0x145   : > { %v264_v59 = vmul.f32 %v263_v58, %v261_v52 }
 0x146   : > { %v272_v63 = vadd.f32 0.9189385, %v271_v60 }
 0x147   : > { %v265_v61 = vadd.f32 0.083333336, %v264_v59 }
 0x149   : > { %v266_v62 = vmul.f32 %v408_v50, %v265_v61 }
 0x14b   : > { %v273_v1 = vadd.f32 %v272_v63, %v266_v62 }
 0x14d   : > { %v281_v5 = vsub.f32 %v273_v1, %v280_v2 }
 0x14f   : > { %v284_v11 = vsub.f32 %v281_v5, %v283_v8 }
 0x152   : > { %v254_v10 = vpop.xlane.xlu1 %253 }
 0x153   : > { %v256_v12 = vsub.f32 %v254_v10, %v255_v7 }
 0x155   : > { %v285_v13 = vsub.f32 %v256_v12, %v284_v11 }
 0x157   : > { %v286_v14 = vadd.f32 -23.739788, %v285_v13 }
 0x159   : > { %v293_v15 = vsel %vm292_vm2, %v286_v14, 0.0 }
 0x15a   : > { %295 = vst.msk [vmem:[%s199_s28] sm:$0xff] %vm294_vm3, %v293_v15 }
 0x15b PF: > { %s13_s12 = sadd.s32 1, %s421_s12  }
 0x15c   : > { %p10_p4 = scmp.ge.s32.totalorder %s13_s12, 5  }
 0x15e   :  { %12 = sbr.rel (!%p10_p4) target bundleno = 1 (0x1), region = 68 }

</bundles_post_ra>
